<compile_context>
chip_gen: v6e
topology: v6e:2x2x1
jax: 0.10.0
libtpu: 0.0.40
codegen_flags: <defaults>
</compile_context>

<pallas_src>
import functools

import jax
import jax.numpy as jnp
from jax import lax
from jax.experimental import pallas as pl
from jax.experimental.pallas import tpu as pltpu


def _round_up(x, m):
    return ((x + m - 1) // m) * m


def _largest_aligned_divisor(total, cap, align=128):
    """Largest multiple of `align` that divides `total` and is <= cap."""
    cap = max(align, (cap // align) * align)
    t = min(cap, total)
    t = max(align, (t // align) * align)
    while t > align and total % t != 0:
        t -= align
    return max(align, t)


def _vmem_budget_bytes():
    """Generation-aware VMEM budget (v5e/v6e ~96MiB, v7x ~48MiB per TC)."""
    try:
        cap = int(pltpu.get_tpu_info().vmem_capacity_bytes)
        if cap <= 0:
            raise ValueError(cap)
    except Exception:
        cap = 64 << 20  # conservative default (v7x per-TC VMEM)
    return max(32 << 20, min(112 << 20, (cap * 3) // 4))


def _batch_hard_kernel(x_ref, pid_row_ref, pid_col_ref, loss_ref, *scratch,
                       margin, valid_b, rows_padded, nj, nk, tn):
    """x_ref: (Bp, tk); pid_row_ref: (1, tn); pid_col_ref: (Bp, 1);
    loss_ref: (1, tn); scratch (only when nk>1): gram (Bp,tn) f32,
    norm_col (Bp,1) f32, norm_row (1,tn) f32."""

    xk = x_ref[...]                                    # (Bp, tk) storage dtype
    xk_f32 = xk.astype(jnp.float32)
    xsq = xk_f32 * xk_f32
    # Full-row squared norms for this D slab, accumulated in f32.
    nrm_col = jnp.sum(xsq, axis=1, keepdims=True)      # (Bp, 1)

    if nj == 1:
        xc = xk                                        # stripe == full rows
        xcsq = xsq
    else:
        j = pl.program_id(0)
        col0 = pl.multiple_of(j * tn, tn)              # tn is a multiple of 128
        xc = x_ref[pl.ds(col0, tn), :]                 # (tn, tk) VMEM slice
        xc_f32 = xc.astype(jnp.float32)
        xcsq = xc_f32 * xc_f32

    # Column-stripe squared norms directly in (1, tn) lane layout via a tiny
    # ones-vector matmul (avoids a sublane->lane relayout in the epilogue).
    ones_row = jnp.ones((1, xsq.shape[1]), jnp.float32)
    nrm_row = lax.dot_general(ones_row, xcsq, (((1,), (1,)), ((), ())),
                              preferred_element_type=jnp.float32)   # (1, tn)

    # Gram stripe contribution of this D slab on the MXU (f32 accumulation).
    g = lax.dot_general(xk, xc, (((1,), (1,)), ((), ())),
                        preferred_element_type=jnp.float32)          # (Bp, tn)

    def _finish(gram, norms_col, norms_row):
        # Squared distances; clamp tiny negatives from cancellation.
        sq = jnp.maximum(norms_col + norms_row - 2.0 * gram, 0.0)    # (Bp, tn)
        mask_pos = pid_col_ref[...] == pid_row_ref[...]              # (Bp, tn)
        if rows_padded:
            row_i = lax.broadcasted_iota(jnp.int32, sq.shape, 0)
            row_valid = row_i < valid_b
            pos_mask = jnp.logical_and(mask_pos, row_valid)
            neg_kill = jnp.logical_or(mask_pos, jnp.logical_not(row_valid))
        else:
            pos_mask = mask_pos
            neg_kill = mask_pos

        big = jnp.float32(9999.9 * 9999.9)   # sqrt(big) ~= reference's 9999.9
        pos_sq = jnp.where(pos_mask, sq, 0.0)
        neg_sq = jnp.where(neg_kill, big, sq)

        # sqrt is monotone -> reduce on squared distances, sqrt only 2*tn vals.
        fp = jnp.sqrt(jnp.max(pos_sq, axis=0, keepdims=True) + 1e-12)
        fn = jnp.sqrt(jnp.min(neg_sq, axis=0, keepdims=True) + 1e-12)
        raw = fp - fn

        # _apply_margin
        if isinstance(margin, float):
            loss = jnp.maximum(raw + jnp.float32(margin), 0.0)
        elif isinstance(margin, str) and margin.lower() == "soft":
            # stable softplus with only exp/log (Mosaic-friendly)
            loss = jnp.maximum(raw, 0.0) + jnp.log(1.0 + jnp.exp(-jnp.abs(raw)))
        elif isinstance(margin, str) and margin.lower() == "none":
            loss = raw
        else:
            raise NotImplementedError(
                "The margin %s is not implemented in BatchHard!" % margin)

        loss_ref[...] = loss.astype(jnp.float32)

    if nk == 1:
        # Single D slab: no scratch accumulators at all.
        _finish(g, nrm_col, nrm_row)
    else:
        gram_acc, ncol_acc, nrow_acc = scratch
        k = pl.program_id(1)

        @pl.when(k == 0)
        def _first():           # write-through, no zero-init pass
            gram_acc[...] = g
            ncol_acc[...] = nrm_col
            nrow_acc[...] = nrm_row

        @pl.when(k > 0)
        def _accum():
            gram_acc[...] += g
            ncol_acc[...] += nrm_col
            nrow_acc[...] += nrm_row

        @pl.when(k == nk - 1)
        def _epilogue():
            _finish(gram_acc[...], ncol_acc[...], nrow_acc[...])


def batch_hard_loss(logits, pids, margin=0.2, *, matmul_in_bf16=True,
                    block_k=None, stripe_min_batch=512):
    """Fused BatchHard forward for one logit tensor.

    logits: (B, D) float array, pids: (B,) int array. Returns loss (B,).
    matmul_in_bf16: store X in bf16 in HBM and feed the MXU in bf16 with f32
    accumulation (norms are always accumulated in f32). Native-rate on v5e,
    v6e and v7x MXUs and halves HBM traffic of the only large operand; set
    False when exact f32 distances are required.
    """
    B, D = logits.shape
    itemsize = 2 if matmul_in_bf16 else 4
    storage_dtype = jnp.bfloat16 if matmul_in_bf16 else jnp.float32

    budget = _vmem_budget_bytes()          # also passed as vmem_limit_bytes
    plan = int(budget * 0.7)               # headroom for compiler temporaries

    # --- column striping (megacore "parallel" axis; shrinks per-TC Gram) ---
    if B >= stripe_min_batch:
        Bp = _round_up(B, 256)
        # keep gram stripe + ~4 epilogue temporaries within ~half the plan
        tn_cap = max(128, plan // (40 * Bp))
        tn = _largest_aligned_divisor(Bp, min(tn_cap, 1024, Bp // 2))
    else:
        Bp = B                              # no padding at all for small B
        tn = Bp
    nj = Bp // tn

    # --- D tiling (split only when a single full-D slab does not fit) ---
    acc_bytes = Bp * tn * 4 + Bp * 4 + tn * 4
    epi_bytes = 4 * Bp * tn * 4
    leftover = max(0, plan - acc_bytes - epi_bytes)
    if block_k is not None:
        tk = int(block_k)
        assert tk % 128 == 0
        Dp = _round_up(D, 128)
        if Dp % tk != 0:
            Dp = _round_up(D, tk)
        nk = Dp // tk
    elif 2 * Bp * D * itemsize <= leftover:
        tk, Dp, nk = D, D, 1                # full-D block, no D pad, no scratch
    else:
        Dp = _round_up(D, 128)              # pad D only to 128, never to tk
        # only the X slab is double-buffered; pids/output are KB-scale
        tk_cap = max(128, leftover // (2 * Bp * itemsize))
        tk = _largest_aligned_divisor(Dp, tk_cap)
        nk = Dp // tk

    # --- operands (pad only when strictly required) ---
    x = logits.astype(storage_dtype)
    pids_i = pids.astype(jnp.int32)
    if Bp > B or Dp > D:
        x = jnp.pad(x, ((0, Bp - B), (0, Dp - D)))
    if Bp > B:
        # pad pids with -1 so pad rows never alias a real identity
        pids_i = jnp.pad(pids_i, (0, Bp - B), constant_values=-1)
    pid_row = pids_i.reshape(1, Bp)          # transposes hoisted out of kernel
    pid_col = pids_i.reshape(Bp, 1)

    kernel = functools.partial(
        _batch_hard_kernel,
        margin=margin,
        valid_b=B,
        rows_padded=(Bp > B),
        nj=nj, nk=nk, tn=tn)

    if nk > 1:
        scratch_shapes = [pltpu.VMEM((Bp, tn), jnp.float32),
                          pltpu.VMEM((Bp, 1), jnp.float32),
                          pltpu.VMEM((1, tn), jnp.float32)]
    else:
        scratch_shapes = []

    cost = pl.CostEstimate(
        flops=int(2 * Bp * Bp * Dp + 2 * nj * Bp * Dp + 12 * Bp * Bp),
        transcendentals=int(2 * Bp),
        bytes_accessed=int(nj * Bp * Dp * itemsize + 3 * Bp * 4))

    out = pl.pallas_call(
        kernel,
        out_shape=jax.ShapeDtypeStruct((1, Bp), jnp.float32),
        grid_spec=pltpu.PrefetchScalarGridSpec(
            num_scalar_prefetch=0,
            grid=(nj, nk),
            in_specs=[
                pl.BlockSpec((Bp, tk), lambda j, k: (0, k)),
                pl.BlockSpec((1, tn), lambda j, k: (0, j)),
                pl.BlockSpec((Bp, 1), lambda j, k: (0, 0)),
            ],
            out_specs=pl.BlockSpec((1, tn), lambda j, k: (0, j)),
            scratch_shapes=scratch_shapes,
        ),
        compiler_params=pltpu.CompilerParams(
            dimension_semantics=("parallel", "arbitrary"),
            vmem_limit_bytes=int(budget)),
        cost_estimate=cost,
    )(x, pid_row, pid_col)
    return out[0, :B]


def _batch_hard_ref(logits, pids, margin=0.2):
    # Pure-JAX reference mirroring the PyTorch code exactly.
    diff = logits[:, None, :] - logits[None, :, :]
    cdist = jnp.sqrt(jnp.sum(diff * diff, axis=2) + 1e-12)
    mask_pos = (pids[None, :] == pids[:, None]).astype(jnp.float32)
    fp = jnp.max(cdist * mask_pos, axis=0)
    fn = jnp.min(cdist + 9999.9 * mask_pos, axis=0)
    raw = fp - fn
    if isinstance(margin, float):
        return jnp.maximum(raw + margin, 0.0)
    if isinstance(margin, str) and margin.lower() == "soft":
        return jax.nn.softplus(raw)
    if isinstance(margin, str) and margin.lower() == "none":
        return raw
    raise NotImplementedError(margin)


if __name__ == "__main__":
    key = jax.random.PRNGKey(0)
    k1, k2 = jax.random.split(key)

    # --- small exact-f32 case: nj=1, nk=1, no padding at all ---
    B, D = 8, 32   # small PK batch of embeddings (4 identities x 2 samples)
    logits = jax.random.normal(k1, (B, D), dtype=jnp.float32)
    pids = jnp.array([0, 0, 1, 1, 2, 2, 3, 3], dtype=jnp.int32)

    loss_f32 = jax.block_until_ready(
        batch_hard_loss(logits, pids, margin=0.2, matmul_in_bf16=False))
    ref = _batch_hard_ref(logits, pids, margin=0.2)
    assert loss_f32.shape == (B,)
    assert jnp.allclose(loss_f32, ref, atol=1e-4, rtol=1e-4), (loss_f32, ref)

    # soft-margin path
    loss_soft = jax.block_until_ready(
        batch_hard_loss(logits, pids, margin="soft", matmul_in_bf16=False))
    ref_soft = _batch_hard_ref(logits, pids, margin="soft")
    assert jnp.allclose(loss_soft, ref_soft, atol=1e-4, rtol=1e-4)

    # default bf16-storage path (compare against reference on bf16-rounded X;
    # norms are f32-accumulated in the kernel so only bf16 input rounding remains)
    loss_bf16 = jax.block_until_ready(batch_hard_loss(logits, pids, margin=0.2))
    ref_bf16 = _batch_hard_ref(
        logits.astype(jnp.bfloat16).astype(jnp.float32), pids, margin=0.2)
    assert jnp.allclose(loss_bf16, ref_bf16, atol=2e-3, rtol=2e-3), (
        loss_bf16, ref_bf16)

    # --- exercise tiled paths: column stripes (parallel axis), multiple K
    #     slabs, row padding with pid=-1, scratch accumulators ---
    B2, D2 = 200, 384
    logits2 = jax.random.normal(k2, (B2, D2), dtype=jnp.float32)
    pids2 = jnp.arange(B2, dtype=jnp.int32) % 50   # 50 identities x 4 samples
    loss2 = jax.block_until_ready(
        batch_hard_loss(logits2, pids2, margin=0.2, matmul_in_bf16=False,
                        block_k=128, stripe_min_batch=128))
    ref2 = _batch_hard_ref(logits2, pids2, margin=0.2)
    assert loss2.shape == (B2,)
    assert jnp.allclose(loss2, ref2, atol=1e-4, rtol=1e-4), float(
        jnp.max(jnp.abs(loss2 - ref2)))

    print("KERNEL_OK")
</pallas_src>

<mosaic_0001>
module attributes {stable_mosaic.version = 11 : i64} {
  func.func @_batch_hard_kernel(%arg0: i32, %arg1: i32, %arg2: memref<8x32xf32, #tpu.memory_space<vmem>>, %arg3: memref<1x8xi32, #tpu.memory_space<vmem>>, %arg4: memref<8x1xi32, #tpu.memory_space<vmem>>, %arg5: memref<1x8xf32, #tpu.memory_space<vmem>>) attributes {dimension_semantics = [#tpu.dimension_semantics<parallel>, #tpu.dimension_semantics<arbitrary>], iteration_bounds = array<i64: 1, 1>, scalar_prefetch = 0 : i64, scratch_operands = 0 : i64, tpu.core_type = #tpu.core_type<tc>, window_params = [{transform_indices = @transform_0, window_bounds = array<i64: 8, 32>}, {transform_indices = @transform_1, window_bounds = array<i64: 1, 8>}, {pipeline_mode = #tpu.pipeline_mode<synchronous>, transform_indices = @transform_2, window_bounds = array<i64: 8, 1>}, {transform_indices = @transform_3, window_bounds = array<i64: 1, 8>}]} {
    %c0 = arith.constant 0 : index
    %c0_0 = arith.constant 0 : index
    %0 = vector.load %arg2[%c0, %c0_0] : memref<8x32xf32, #tpu.memory_space<vmem>>, vector<8x32xf32>
    %1 = arith.mulf %0, %0 : vector<8x32xf32>
    %cst = arith.constant dense<0.000000e+00> : vector<8xf32>
    %2 = vector.multi_reduction <add>, %1, %cst [1] : vector<8x32xf32> to vector<8xf32>
    %3 = vector.shape_cast %2 : vector<8xf32> to vector<8x1xf32>
    %cst_1 = arith.constant 1.000000e+00 : f32
    %4 = vector.broadcast %cst_1 : f32 to vector<1x32xf32>
    %cst_2 = arith.constant dense<0.000000e+00> : vector<1x8xf32>
    %5 = tpu.matmul %4, %1, %cst_2 {dimension_numbers = #tpu.dot_dimension_numbers<[1], [1], [0], [0], [0, 0, 1, 0], [], []>} : vector<1x32xf32>, vector<8x32xf32>, vector<1x8xf32> -> vector<1x8xf32>
    %cst_3 = arith.constant dense<0.000000e+00> : vector<8x8xf32>
    %6 = tpu.matmul %0, %0, %cst_3 {dimension_numbers = #tpu.dot_dimension_numbers<[1], [1], [0], [0], [0, 0, 1, 0], [], []>} : vector<8x32xf32>, vector<8x32xf32>, vector<8x8xf32> -> vector<8x8xf32>
    %7 = vector.broadcast %3 : vector<8x1xf32> to vector<8x8xf32>
    %8 = vector.broadcast %5 : vector<1x8xf32> to vector<8x8xf32>
    %9 = arith.addf %7, %8 : vector<8x8xf32>
    %cst_4 = arith.constant 2.000000e+00 : f32
    %10 = vector.broadcast %cst_4 : f32 to vector<8x8xf32>
    %11 = arith.mulf %10, %6 : vector<8x8xf32>
    %12 = arith.subf %9, %11 : vector<8x8xf32>
    %cst_5 = arith.constant 0.000000e+00 : f32
    %13 = vector.broadcast %cst_5 : f32 to vector<8x8xf32>
    %14 = arith.maximumf %12, %13 : vector<8x8xf32>
    %c0_6 = arith.constant 0 : index
    %c0_7 = arith.constant 0 : index
    %15 = vector.load %arg4[%c0_6, %c0_7] : memref<8x1xi32, #tpu.memory_space<vmem>>, vector<8x1xi32>
    %c0_8 = arith.constant 0 : index
    %c0_9 = arith.constant 0 : index
    %16 = vector.load %arg3[%c0_8, %c0_9] : memref<1x8xi32, #tpu.memory_space<vmem>>, vector<1x8xi32>
    %17 = vector.broadcast %15 : vector<8x1xi32> to vector<8x8xi32>
    %18 = vector.broadcast %16 : vector<1x8xi32> to vector<8x8xi32>
    %19 = arith.cmpi eq, %17, %18 : vector<8x8xi32>
    %cst_10 = arith.constant 0.000000e+00 : f32
    %20 = vector.broadcast %cst_10 : f32 to vector<8x8xf32>
    %21 = arith.select %19, %14, %20 : vector<8x8xi1>, vector<8x8xf32>
    %cst_11 = arith.constant 9.999800e+07 : f32
    %22 = vector.broadcast %cst_11 : f32 to vector<8x8xf32>
    %23 = arith.select %19, %22, %14 : vector<8x8xi1>, vector<8x8xf32>
    %cst_12 = arith.constant dense<0xFF800000> : vector<8xf32>
    %24 = vector.multi_reduction <maximumf>, %21, %cst_12 [0] : vector<8x8xf32> to vector<8xf32>
    %25 = vector.shape_cast %24 : vector<8xf32> to vector<1x8xf32>
    %cst_13 = arith.constant 9.99999996E-13 : f32
    %26 = vector.broadcast %cst_13 : f32 to vector<1x8xf32>
    %27 = arith.addf %25, %26 : vector<1x8xf32>
    %28 = math.sqrt %27 : vector<1x8xf32>
    %cst_14 = arith.constant dense<0x7F800000> : vector<8xf32>
    %29 = vector.multi_reduction <minimumf>, %23, %cst_14 [0] : vector<8x8xf32> to vector<8xf32>
    %30 = vector.shape_cast %29 : vector<8xf32> to vector<1x8xf32>
    %cst_15 = arith.constant 9.99999996E-13 : f32
    %31 = vector.broadcast %cst_15 : f32 to vector<1x8xf32>
    %32 = arith.addf %30, %31 : vector<1x8xf32>
    %33 = math.sqrt %32 : vector<1x8xf32>
    %34 = arith.subf %28, %33 : vector<1x8xf32>
    %cst_16 = arith.constant 2.000000e-01 : f32
    %35 = vector.broadcast %cst_16 : f32 to vector<1x8xf32>
    %36 = arith.addf %34, %35 : vector<1x8xf32>
    %cst_17 = arith.constant 0.000000e+00 : f32
    %37 = vector.broadcast %cst_17 : f32 to vector<1x8xf32>
    %38 = arith.maximumf %36, %37 : vector<1x8xf32>
    %c0_18 = arith.constant 0 : index
    %c0_19 = arith.constant 0 : index
    %39 = vector.load %arg5[%c0_18, %c0_19] : memref<1x8xf32, #tpu.memory_space<vmem>>, vector<1x8xf32>
    tpu.vector_store %arg5[%c0_18, %c0_19], %38 {strides = array<i32>} : memref<1x8xf32, #tpu.memory_space<vmem>>, vector<1x8xf32>,
    return
  }
  func.func @transform_0(%arg0: i32, %arg1: i32) -> (i32, i32) {
    %c0_i32 = arith.constant 0 : i32
    %c0_i32_0 = arith.constant 0 : i32
    return %c0_i32, %arg1 : i32, i32
  }
  func.func @transform_1(%arg0: i32, %arg1: i32) -> (i32, i32) {
    %c0_i32 = arith.constant 0 : i32
    %c0_i32_0 = arith.constant 0 : i32
    return %c0_i32, %arg0 : i32, i32
  }
  func.func @transform_2(%arg0: i32, %arg1: i32) -> (i32, i32) {
    %c0_i32 = arith.constant 0 : i32
    %c0_i32_0 = arith.constant 0 : i32
    %c0_i32_1 = arith.constant 0 : i32
    return %c0_i32, %c0_i32_0 : i32, i32
  }
  func.func @transform_3(%arg0: i32, %arg1: i32) -> (i32, i32) {
    %c0_i32 = arith.constant 0 : i32
    %c0_i32_0 = arith.constant 0 : i32
    return %c0_i32, %arg0 : i32, i32
  }
}

</mosaic_0001>

<bundles_post_ra>
// kernel: tpu_custom_call.1
= control target key start
LH: loop header
LB: loop body
LE: loop exit
PB: predicated region body
PF: predicated region fallthrough
CT: control target
= control target key end

     0   :  { %vm17_vm0 = vcmask 261120   ;;  %v291_v1 = vmov 0.0   ;;  %s333_s0 = inlined_call_operand.vmem [shape: f32[8,32], index: 0, kind: input, shape index: {}]   ;;  %s334_s1 = inlined_call_operand.vmem [shape: s32[1,8], index: 1, kind: input, shape index: {}]   ;;  %s335_s2 = inlined_call_operand.vmem [shape: s32[8,1], index: 2, kind: input, shape index: {}]   ;;  %s336_s3 = inlined_call_operand.hbm [shape: f32[1,8], index: 3, kind: output, shape index: {}]  }
   0x1   :  { %v15_v0 = vld [vmem:[%s333_s0] sm:$0xff]  ;;  %249 = vmatprep.subr.mxu0 %v291_v1  ;;  %254 = vmatprep.subr.mxu1 %v291_v1 }
   0x2   :  { %v16_v2 = vmul.f32 %v15_v0, %v15_v0 }
   0x3   :  { %8 = vsyncpa [#allocation3], 0  ;;  %255 = vmatpush3.xpose.msk.msra.mxu1 %vm17_vm0, %v15_v0  ;;  %vm292_vm1 = vmmov 0   ;;  %v293_v4 = vmov 0   ;;  %v294_v5 = vmov 1.0   ;;  %v178_v6 = vld [vmem:[%s335_s2] sm:$0xff]  ;;  %v170_v7 = vlaneseq }
   0x4   :  { %251 = vmatprep.mubr.msk.f32.mxu0 %vm292_vm1, %v291_v1  ;;  %250 = vmatpush3.xpose.msk.msra.mxu0 %vm17_vm0, %v16_v2  ;;  %v18_v3 = vsel %vm17_vm0, %v16_v2, 0.0  ;;  %v244_v18 = vld [vmem:[%s334_s1] ss:$0 sm:$0xff]  ;;  %vm190_vm3 = vcmask 64512   ;;  %s295_s1 = smov [#allocation2]   ;;  %vm224_vm8 = vcmask 57344  }
   0x5   :  { %256 = vmatprep.mubr.msk.f32.mxu1 %vm292_vm1, %v291_v1  ;;  %19 = vadd.xlane.f32.xlu0 %v18_v3  ;;  %v171_v8 = vshrl.u32 %v170_v7, 7  ;;  %s232_s2 = sshll.u32 %s295_s1, 4  ;;  %s233_s2 = int_to_ptr.vmem [resolvable:$true] %s232_s2 }
   0x6   :  { %257 = vmatmul.mubr.msk.f32.vlgmr.msra.gmra.mxu1 %vm17_vm0, %v15_v0  ;;  %264 = vset.pattern.permute.xlu0 %v293_v4  ;;  %s269_s17 = scalar_lea.vmem %s233_s2, 16  ;;  %s273_s18 = scalar_lea.vmem %s233_s2, 32 }
   0x7   :  { %252 = vmatmul.mubr.msk.f32.vlgmr.msra.gmra.mxu0 %vm17_vm0, %v294_v5  ;;  %v172_v9 = vsub.s32 0, %v171_v8  ;;  %p270_p0 = scmp.ne.s32.totalorder %s233_s2, %s269_s17  ;;  %p274_p1 = scmp.lt.s32.totalorder %s233_s2, %s233_s2 }
   0x8   :  { %p275_p2 = scmp.lt.s32.totalorder %s273_s18, %s269_s17 }
   0xa   :  { %p276_p3 = por %p275_p2, %p274_p1 }
   0xc   :  { %p277_p4 = pnand %p276_p3, %p270_p0 }
  0x1b   :  { %181 = vperm.xlu0 %264, %v178_v6  }
  0x8e   :  { %v20_v10 = vpop.xlane.xlu0 %19 }
  0x96   :  { %v182_v19 = vpop.permute.xlu0 %181 }
  0x97   :  { %vm187_vm2 = vcmp.eq.s32.totalorder %v182_v19, %v244_v18 }
  0xc6   :  { %v166_v11 = vpop.f32.mrf.mxu1 }
  0xc7   :  { %v93_v12 = vpop.f32.mrf.mxu0  ;;  %v175_v14 = vmul.f32 2.0, %v166_v11 }
  0xc8   :  { %v173_v13 = vrot.slane %v93_v12, %v172_v9  ;;  %v258_v15 = vpop.f32.mrf.mxu1 }
  0xc9   :  { %v253_v16 = vpop.f32.mrf.mxu0 }
  0xca   :  { %v174_v17 = vadd.f32 %v173_v13, %v20_v10 }
  0xcc   :  { %v176_v20 = vsub.f32 %v174_v17, %v175_v14 }
  0xce   :  { %v177_v21 = vmax.f32 %v176_v20, 0.0 }
  0xd0   :  { %v188_v22 = vsel %vm187_vm2, %v177_v21, 0.0  ;;  %v189_v23 = vsel %vm187_vm2, 99998000.0, %v177_v21 }
  0xd1   :  { %v191_v24 = vsel %vm190_vm3, %v188_v22, -inf  ;;  %v206_v25 = vsel %vm190_vm3, %v189_v23, inf }
  0xd2   :  { %v192_v26 = vrot.slane %v191_v24, 4  ;;  %v207_v27 = vrot.slane %v206_v25, 4 }
  0xd4   :  { %v193_v28 = vmax.f32 %v191_v24, %v192_v26  ;;  %v208_v29 = vmin.f32 %v206_v25, %v207_v27 }
  0xd6   :  { %v194_v30 = vrot.slane %v193_v28, 2  ;;  %v209_v31 = vrot.slane %v208_v29, 2 }
  0xd8   :  { %v195_v32 = vmax.f32 %v193_v28, %v194_v30  ;;  %v210_v33 = vmin.f32 %v208_v29, %v209_v31 }
  0xda   :  { %v196_v34 = vrot.slane %v195_v32, 1  ;;  %v211_v35 = vrot.slane %v210_v33, 1 }
  0xdc   :  { %v197_v36 = vmax.f32 %v195_v32, %v196_v34  ;;  %v212_v37 = vmin.f32 %v210_v33, %v211_v35 }
  0xde   :  { %v198_v38 = vadd.f32 1e-12, %v197_v36  ;;  %v213_v39 = vadd.f32 1e-12, %v212_v37 }
  0xe0   :  { %265 = vrsqrt.f32 %v198_v38  ;;  %vm201_vm4 = vcmp.eq.f32.partialorder %v198_v38, inf  ;;  %v204_v43 = vand.u32 2147483648, %v198_v38  ;;  %vm203_vm5 = vcmp.eq.f32.partialorder %v198_v38, 0.0 }
  0xe1   :  { %267 = vrsqrt.f32 %v213_v39  ;;  %vm216_vm6 = vcmp.eq.f32.partialorder %v213_v39, inf  ;;  %v219_v46 = vand.u32 2147483648, %v213_v39  ;;  %vm218_vm7 = vcmp.eq.f32.partialorder %v213_v39, 0.0 }
  0xed   :  { %v266_v40 = vpop.eup %265 }
  0xee   :  { %v268_v41 = vpop.eup %267  ;;  %v200_v42 = vmul.f32 %v266_v40, %v198_v38 }
  0xef   :  { %v215_v44 = vmul.f32 %v268_v41, %v213_v39 }
  0xf0   :  { %v202_v45 = vsel %vm201_vm4, %v198_v38, %v200_v42 }
  0xf1   :  { %v205_v47 = vsel %vm203_vm5, %v204_v43, %v202_v45  ;;  %v217_v48 = vsel %vm216_vm6, %v213_v39, %v215_v44 }
  0xf2   :  { %v220_v49 = vsel %vm218_vm7, %v219_v46, %v217_v48 }
  0xf3   :  { %v221_v50 = vsub.f32 %v205_v47, %v220_v49 }
  0xf5   :  { %v222_v51 = vadd.f32 0.2, %v221_v50 }
  0xf7   :  { %v223_v52 = vmax.f32 %v222_v51, 0.0 }
  0xf9   :  { %225 = vst.msk [vmem:[#allocation2] sm:$0x1] %vm224_vm8, %v223_v52 }
  0xfa   :  { %280 = shalt.err (!%p277_p4)
}
  0xfb   :  { %235 = dma.vmem_to_hbm [thread:$0]  %s233_s2, 16, %s336_s3, [#allocation3]  }
  0xfc   :  { %289 = dma.done.wait [#allocation3], 16  }
  0xfd   :  { %290 = vsyncadd [#allocation3], 4294967280 }
  0xfe   :  { %239 = vsyncpa [#allocation3], 1 }

</bundles_post_ra>
